<compile_context>
chip_gen: v5e
topology: v5e:2x2
jax: 0.10.0
libtpu: 0.0.40
codegen_flags: <defaults>
</compile_context>

<pallas_src>
import jax
import jax.numpy as jnp
from jax.experimental import pallas as pl
from jax.experimental.pallas import tpu as pltpu

n_embd = 32
hidden = 4 * n_embd  # 128
dropout = 0.0        # Dropout(p=0.0) is the identity -> nothing to do.


def _round_up(x, m):
    return (x + m - 1) // m * m


def feedforward_kernel(x_ref, w1_ref, b1_ref, w2_ref, b2_ref, o_ref):
    # Packed, lane-dense shapes (E=32, pack=4):
    #   x_ref:  (TM, 128)   -- TM packed rows == 4*TM tokens
    #   w1_ref: (128, 512), b1_ref: (1, 512)   -- resident in VMEM across grid
    #   w2_ref: (512, 128), b2_ref: (1, 128)   -- resident in VMEM across grid
    #   o_ref:  (TM, 128)
    x = x_ref[...]
    h = jnp.dot(x, w1_ref[...], preferred_element_type=jnp.float32) + b1_ref[...]
    h = jnp.maximum(h, 0.0)  # ReLU
    y = jnp.dot(h, w2_ref[...], preferred_element_type=jnp.float32) + b2_ref[...]
    # Dropout(p=0.0) is a no-op.
    o_ref[...] = y.astype(o_ref.dtype)


def feedforward(x, w1, b1, w2, b2, *, block_rows=1024):
    """x: (B, T, n_embd) float32 -> (B, T, n_embd) float32.

    block_rows is the packed-row tile (1 packed row = 128/n_embd tokens).
    """
    B, T, E = x.shape
    H = w1.shape[1]
    M = B * T
    assert 128 % E == 0, "lane packing requires n_embd to divide 128"
    pack = 128 // E  # tokens per 128-lane row (= 4 for n_embd = 32)

    # ---- lane-dense packing (free row-major reshapes) ----------------------
    x2d = x.reshape(M, E)
    m_pack = _round_up(M, pack)
    if m_pack != M:  # at most pack-1 rows of padding; negligible traffic
        x2d = jnp.pad(x2d, ((0, m_pack - M), (0, 0)))
    Mp = m_pack // pack
    x_p = x2d.reshape(Mp, pack * E)  # (Mp, 128)

    # Block-diagonal packed weights: numerically exact in f32 (extra terms
    # of the contraction are exact zeros), so results match unpacked math.
    eye = jnp.eye(pack, dtype=x.dtype)
    w1_p = jnp.kron(eye, w1)                           # (128, 512)
    w2_p = jnp.kron(eye, w2)                           # (512, 128)
    b1_p = jnp.tile(b1, pack).reshape(1, pack * H)     # (1, 512)
    b2_p = jnp.tile(b2, pack).reshape(1, pack * E)     # (1, 128)

    # ---- tile selection -----------------------------------------------------
    if Mp <= 8:
        tm = Mp                       # block == full array extent (tiny demo)
    else:
        # multiple of 8 sublanes; cap for VMEM (block_rows) and keep the grid
        # >= ~8 steps so v7x megacore + double-buffering stay fed.
        tm = max(8, min(block_rows, _round_up(pl.cdiv(Mp, 8), 8)))
    grid = (pl.cdiv(Mp, tm),)         # partial last block: masked writeback

    bytes_per = jnp.dtype(x.dtype).itemsize
    flops = 4 * Mp * (pack * E) * (pack * H)           # two packed matmuls
    bytes_accessed = (
        2 * Mp * pack * E                               # x_p in + out
        + 2 * (pack * E) * (pack * H)                   # packed w1, w2
        + pack * H + pack * E                           # packed b1, b2
    ) * bytes_per

    out_p = pl.pallas_call(
        feedforward_kernel,
        out_shape=jax.ShapeDtypeStruct((Mp, pack * E), x.dtype),
        grid=grid,
        in_specs=[
            pl.BlockSpec((tm, pack * E), lambda i: (i, 0)),        # x: tiled
            pl.BlockSpec((pack * E, pack * H), lambda i: (0, 0)),  # w1_p: resident
            pl.BlockSpec((1, pack * H), lambda i: (0, 0)),         # b1_p: resident
            pl.BlockSpec((pack * H, pack * E), lambda i: (0, 0)),  # w2_p: resident
            pl.BlockSpec((1, pack * E), lambda i: (0, 0)),         # b2_p: resident
        ],
        out_specs=pl.BlockSpec((tm, pack * E), lambda i: (i, 0)),
        compiler_params=pltpu.CompilerParams(
            dimension_semantics=("parallel",),  # rows independent -> megacore on v7x
        ),
        cost_estimate=pl.CostEstimate(
            flops=flops, transcendentals=0, bytes_accessed=bytes_accessed
        ),
    )(x_p, w1_p, b1_p, w2_p, b2_p)

    out = out_p.reshape(m_pack, E)  # free unpack
    if m_pack != M:
        out = out[:M]
    return out.reshape(B, T, E)


def init_params(key):
    """Deterministic init mimicking nn.Linear defaults (U(-1/sqrt(fan_in), +))."""
    k1, k2, k3, k4 = jax.random.split(key, 4)
    bound1 = 1.0 / jnp.sqrt(jnp.float32(n_embd))
    bound2 = 1.0 / jnp.sqrt(jnp.float32(hidden))
    # Stored as (in_features, out_features): equivalent to PyTorch weight.T
    w1 = jax.random.uniform(k1, (n_embd, hidden), jnp.float32, -bound1, bound1)
    b1 = jax.random.uniform(k2, (hidden,), jnp.float32, -bound1, bound1)
    w2 = jax.random.uniform(k3, (hidden, n_embd), jnp.float32, -bound2, bound2)
    b2 = jax.random.uniform(k4, (n_embd,), jnp.float32, -bound2, bound2)
    return w1, b1, w2, b2


if __name__ == "__main__":
    key = jax.random.PRNGKey(0)
    kx, kp = jax.random.split(key)

    B, T = 2, 8
    x = jax.random.normal(kx, (B, T, n_embd), jnp.float32)
    w1, b1, w2, b2 = init_params(kp)

    y = feedforward(x, w1, b1, w2, b2)
    jax.block_until_ready(y)

    # Reference check in plain JAX
    ref = jnp.maximum(x.reshape(-1, n_embd) @ w1 + b1, 0.0) @ w2 + b2
    ref = ref.reshape(B, T, n_embd)
    assert y.shape == (B, T, n_embd)
    assert jnp.allclose(y, ref, atol=1e-5, rtol=1e-5), "mismatch vs reference"

    print("KERNEL_OK")
</pallas_src>

<mosaic_0001>
module attributes {stable_mosaic.version = 11 : i64} {
  func.func @feedforward_kernel(%arg0: i32, %arg1: memref<4x128xf32, #tpu.memory_space<vmem>>, %arg2: memref<128x512xf32, #tpu.memory_space<vmem>>, %arg3: memref<1x512xf32, #tpu.memory_space<vmem>>, %arg4: memref<512x128xf32, #tpu.memory_space<vmem>>, %arg5: memref<1x128xf32, #tpu.memory_space<vmem>>, %arg6: memref<4x128xf32, #tpu.memory_space<vmem>>) attributes {dimension_semantics = [#tpu.dimension_semantics<parallel>], iteration_bounds = array<i64: 1>, scalar_prefetch = 0 : i64, scratch_operands = 0 : i64, tpu.core_type = #tpu.core_type<tc>, window_params = [{transform_indices = @transform_0, window_bounds = array<i64: 4, 128>}, {pipeline_mode = #tpu.pipeline_mode<synchronous>, transform_indices = @transform_1, window_bounds = array<i64: 128, 512>}, {pipeline_mode = #tpu.pipeline_mode<synchronous>, transform_indices = @transform_2, window_bounds = array<i64: 1, 512>}, {pipeline_mode = #tpu.pipeline_mode<synchronous>, transform_indices = @transform_3, window_bounds = array<i64: 512, 128>}, {pipeline_mode = #tpu.pipeline_mode<synchronous>, transform_indices = @transform_4, window_bounds = array<i64: 1, 128>}, {transform_indices = @transform_5, window_bounds = array<i64: 4, 128>}]} {
    %c0 = arith.constant 0 : index
    %c0_0 = arith.constant 0 : index
    %0 = vector.load %arg1[%c0, %c0_0] : memref<4x128xf32, #tpu.memory_space<vmem>>, vector<4x128xf32>
    %c0_1 = arith.constant 0 : index
    %c0_2 = arith.constant 0 : index
    %1 = vector.load %arg2[%c0_1, %c0_2] : memref<128x512xf32, #tpu.memory_space<vmem>>, vector<128x512xf32>
    %cst = arith.constant dense<0.000000e+00> : vector<4x512xf32>
    %2 = tpu.matmul %0, %1, %cst {dimension_numbers = #tpu.dot_dimension_numbers<[1], [0], [0], [1], [0, 0, 1, 1], [], []>} : vector<4x128xf32>, vector<128x512xf32>, vector<4x512xf32> -> vector<4x512xf32>
    %c0_3 = arith.constant 0 : index
    %c0_4 = arith.constant 0 : index
    %3 = vector.load %arg3[%c0_3, %c0_4] : memref<1x512xf32, #tpu.memory_space<vmem>>, vector<1x512xf32>
    %4 = vector.broadcast %3 : vector<1x512xf32> to vector<4x512xf32>
    %5 = arith.addf %2, %4 : vector<4x512xf32>
    %cst_5 = arith.constant 0.000000e+00 : f32
    %6 = vector.broadcast %cst_5 : f32 to vector<4x512xf32>
    %7 = arith.maximumf %5, %6 : vector<4x512xf32>
    %c0_6 = arith.constant 0 : index
    %c0_7 = arith.constant 0 : index
    %8 = vector.load %arg4[%c0_6, %c0_7] : memref<512x128xf32, #tpu.memory_space<vmem>>, vector<512x128xf32>
    %cst_8 = arith.constant dense<0.000000e+00> : vector<4x128xf32>
    %9 = tpu.matmul %7, %8, %cst_8 {dimension_numbers = #tpu.dot_dimension_numbers<[1], [0], [0], [1], [0, 0, 1, 1], [], []>} : vector<4x512xf32>, vector<512x128xf32>, vector<4x128xf32> -> vector<4x128xf32>
    %c0_9 = arith.constant 0 : index
    %c0_10 = arith.constant 0 : index
    %10 = vector.load %arg5[%c0_9, %c0_10] : memref<1x128xf32, #tpu.memory_space<vmem>>, vector<1x128xf32>
    %11 = vector.broadcast %10 : vector<1x128xf32> to vector<4x128xf32>
    %12 = arith.addf %9, %11 : vector<4x128xf32>
    %c0_11 = arith.constant 0 : index
    %c0_12 = arith.constant 0 : index
    %13 = vector.load %arg6[%c0_11, %c0_12] : memref<4x128xf32, #tpu.memory_space<vmem>>, vector<4x128xf32>
    tpu.vector_store %arg6[%c0_11, %c0_12], %12 {strides = array<i32>} : memref<4x128xf32, #tpu.memory_space<vmem>>, vector<4x128xf32>,
    return
  }
  func.func @transform_0(%arg0: i32) -> (i32, i32) {
    %c0_i32 = arith.constant 0 : i32
    %c0_i32_0 = arith.constant 0 : i32
    return %arg0, %c0_i32 : i32, i32
  }
  func.func @transform_1(%arg0: i32) -> (i32, i32) {
    %c0_i32 = arith.constant 0 : i32
    %c0_i32_0 = arith.constant 0 : i32
    %c0_i32_1 = arith.constant 0 : i32
    return %c0_i32, %c0_i32_0 : i32, i32
  }
  func.func @transform_2(%arg0: i32) -> (i32, i32) {
    %c0_i32 = arith.constant 0 : i32
    %c0_i32_0 = arith.constant 0 : i32
    %c0_i32_1 = arith.constant 0 : i32
    return %c0_i32, %c0_i32_0 : i32, i32
  }
  func.func @transform_3(%arg0: i32) -> (i32, i32) {
    %c0_i32 = arith.constant 0 : i32
    %c0_i32_0 = arith.constant 0 : i32
    %c0_i32_1 = arith.constant 0 : i32
    return %c0_i32, %c0_i32_0 : i32, i32
  }
  func.func @transform_4(%arg0: i32) -> (i32, i32) {
    %c0_i32 = arith.constant 0 : i32
    %c0_i32_0 = arith.constant 0 : i32
    %c0_i32_1 = arith.constant 0 : i32
    return %c0_i32, %c0_i32_0 : i32, i32
  }
  func.func @transform_5(%arg0: i32) -> (i32, i32) {
    %c0_i32 = arith.constant 0 : i32
    %c0_i32_0 = arith.constant 0 : i32
    return %arg0, %c0_i32 : i32, i32
  }
}

</mosaic_0001>

<bundles_post_ra>
// kernel: tpu_custom_call.1
= control target key start
LH: loop header
LB: loop body
LE: loop exit
PB: predicated region body
PF: predicated region fallthrough
CT: control target
= control target key end

     0   :  { %10 = vsyncpa [#allocation3], 0  ;;  %s602_s0 = inlined_call_operand.hbm [shape: f32[4,128], index: 0, kind: input, shape index: {}]   ;;  %s603_s1 = inlined_call_operand.hbm [shape: f32[128,512], index: 1, kind: input, shape index: {}]   ;;  %s604_s2 = inlined_call_operand.hbm [shape: f32[1,512], index: 2, kind: input, shape index: {}]   ;;  %s605_s3 = inlined_call_operand.hbm [shape: f32[512,128], index: 3, kind: input, shape index: {}]   ;;  %s606_s4 = inlined_call_operand.vmem [shape: f32[1,128], index: 4, kind: input, shape index: {}]   ;;  %s607_s5 = inlined_call_operand.hbm [shape: f32[4,128], index: 5, kind: output, shape index: {}]  }
   0x1   :  { %11 = vsyncpa [#allocation6], 0 }
   0x2   :  { %12 = vsyncpa [#allocation9], 0  ;;  %s29_s20 = sshll.u32 %s603_s1, 4  ;;  %s30_s20 = int_to_ptr.hbm [resolvable:$true] %s29_s20 }
   0x3   :  { %13 = vsyncpa [#allocation4], 0  ;;  %s545_s21 = smov [#allocation5]   ;;  %s19_s25 = sshll.u32 %s602_s0, 4  ;;  %s20_s25 = int_to_ptr.hbm [resolvable:$true] %s19_s25 }
   0x4   :  { %s31_s22 = sshll.u32 %s545_s21, 4  ;;  %s546_s26 = smov 512   ;;  %s32_s22 = int_to_ptr.vmem [resolvable:$true] %s31_s22 }
   0x5   :  { %s547_s27 = smov 32   ;;  %s548_s28 = smov [#allocation2]  }
   0x6   :  { %37 = dma.hbm_to_vmem [thread:$0]  %s30_s20, 8192, %s32_s22, [#allocation6], %s546_s26, %s546_s26, %s547_s27  }
   0x7   :  { %s21_s29 = sshll.u32 %s548_s28, 4  ;;  %s43_s7 = sshll.u32 %s604_s2, 4  ;;  %s22_s29 = int_to_ptr.vmem [resolvable:$true] %s21_s29  ;;  %s44_s7 = int_to_ptr.hbm [resolvable:$true] %s43_s7 }
   0x8   :  { %24 = dma.hbm_to_vmem [thread:$0]  %s20_s25, 64, %s22_s29, [#allocation3]  }
   0x9   :  { %s53_s9 = sshll.u32 %s605_s3, 4  ;;  %s549_s10 = smov [#allocation7]   ;;  %s54_s9 = int_to_ptr.hbm [resolvable:$true] %s53_s9 }
   0xa   :  { %s45_s11 = sshll.u32 %s549_s10, 4  ;;  %s550_s0 = smov [#allocation8]   ;;  %s46_s11 = int_to_ptr.vmem [resolvable:$true] %s45_s11 }
   0xb   :  { %48 = dma.hbm_to_vmem [thread:$0]  %s44_s7, 64, %s46_s11, [#allocation6]  }
   0xc   :  { %s55_s12 = sshll.u32 %s550_s0, 4  ;;  %s551_s13 = smov 128   ;;  %s56_s12 = int_to_ptr.vmem [resolvable:$true] %s55_s12 }
   0xd   :  { %s552_s14 = smov 8  }
   0xe   :  { %61 = dma.hbm_to_vmem [thread:$0]  %s54_s9, 8192, %s56_s12, [#allocation9], %s551_s13, %s551_s13, %s552_s14  }
   0xf   :  { %537 = dma.done.wait [#allocation3], 64  }
  0x10   :  { %538 = vsyncadd [#allocation3], 4294967232 }
  0x11   :  { %539 = dma.done.wait [#allocation6], 8256  }
  0x12   :  { %540 = vsyncadd [#allocation6], 4294959040 }
  0x13   :  { %541 = dma.done.wait [#allocation9], 8192  }
  0x14   :  { %542 = vsyncadd [#allocation9], 4294959104  ;;  %v143_v0 = vld [vmem:[#allocation5 + $0x1f0] sm:$0xff]  ;;  %v144_v2 = vld [vmem:[#allocation5 + $0x1f8] sm:$0xff]  ;;  %s553_s15 = smov [#allocation10]   ;;  %s395_s19 = sshll.u32 %s607_s5, 4  ;;  %s396_s19 = int_to_ptr.hbm [resolvable:$true] %s395_s19 }
  0x15   :  { %v139_v1 = vld [vmem:[#allocation5 + $0x1d0] sm:$0xff]  ;;  %195 = vmatpush.msra.mxu2 %v143_v0  ;;  %215 = vmatpush.msra.mxu3 %v144_v2  ;;  %v140_v3 = vld [vmem:[#allocation5 + $0x1d8] sm:$0xff]  ;;  %v141_v6 = vld [vmem:[#allocation5 + $0x1e0] sm:$0xff]  ;;  %s393_s16 = sshll.u32 %s553_s15, 4  ;;  %s394_s16 = int_to_ptr.vmem [resolvable:$true] %s393_s16 }
  0x16   :  { %v135_v4 = vld [vmem:[#allocation5 + $0x1b0] sm:$0xff]  ;;  %v136_v5 = vld [vmem:[#allocation5 + $0x1b8] sm:$0xff]  ;;  %v137_v7 = vld [vmem:[#allocation5 + $0x1c0] sm:$0xff]  ;;  %155 = vmatpush.msra.mxu0 %v141_v6 }
  0x17   :  { %196 = vmatpush.msra.mxu2 %v139_v1  ;;  %216 = vmatpush.msra.mxu3 %v140_v3  ;;  %v142_v8 = vld [vmem:[#allocation5 + $0x1e8] sm:$0xff]  ;;  %v131_v9 = vld [vmem:[#allocation5 + $0x190] sm:$0xff]  ;;  %v132_v10 = vld [vmem:[#allocation5 + $0x198] sm:$0xff] }
  0x18   :  { %175 = vmatpush.msra.mxu1 %v142_v8  ;;  %v133_v11 = vld [vmem:[#allocation5 + $0x1a0] sm:$0xff]  ;;  %v138_v12 = vld [vmem:[#allocation5 + $0x1c8] sm:$0xff]  ;;  %v127_v13 = vld [vmem:[#allocation5 + $0x170] sm:$0xff]  ;;  %156 = vmatpush.msra.mxu0 %v137_v7 }
  0x19   :  { %197 = vmatpush.msra.mxu2 %v135_v4  ;;  %217 = vmatpush.msra.mxu3 %v136_v5  ;;  %v128_v14 = vld [vmem:[#allocation5 + $0x178] sm:$0xff]  ;;  %v134_v15 = vld [vmem:[#allocation5 + $0x1a8] sm:$0xff]  ;;  %v129_v16 = vld [vmem:[#allocation5 + $0x180] sm:$0xff] }
  0x1a   :  { %176 = vmatpush.msra.mxu1 %v138_v12  ;;  %v130_v17 = vld [vmem:[#allocation5 + $0x188] sm:$0xff]  ;;  %v123_v18 = vld [vmem:[#allocation5 + $0x150] sm:$0xff]  ;;  %157 = vmatpush.msra.mxu0 %v133_v11  ;;  %v124_v19 = vld [vmem:[#allocation5 + $0x158] sm:$0xff] }
  0x1b   :  { %198 = vmatpush.msra.mxu2 %v131_v9  ;;  %218 = vmatpush.msra.mxu3 %v132_v10  ;;  %v125_v20 = vld [vmem:[#allocation5 + $0x160] sm:$0xff]  ;;  %v126_v21 = vld [vmem:[#allocation5 + $0x168] sm:$0xff]  ;;  %v119_v22 = vld [vmem:[#allocation5 + $0x130] sm:$0xff] }
  0x1c   :  { %177 = vmatpush.msra.mxu1 %v134_v15  ;;  %158 = vmatpush.msra.mxu0 %v129_v16  ;;  %v120_v23 = vld [vmem:[#allocation5 + $0x138] sm:$0xff]  ;;  %v121_v24 = vld [vmem:[#allocation5 + $0x140] sm:$0xff]  ;;  %v122_v25 = vld [vmem:[#allocation5 + $0x148] sm:$0xff] }
  0x1d   :  { %199 = vmatpush.msra.mxu2 %v127_v13  ;;  %219 = vmatpush.msra.mxu3 %v128_v14  ;;  %v115_v26 = vld [vmem:[#allocation5 + $0x110] sm:$0xff]  ;;  %v116_v27 = vld [vmem:[#allocation5 + $0x118] sm:$0xff]  ;;  %v117_v28 = vld [vmem:[#allocation5 + $0x120] sm:$0xff] }
  0x1e   :  { %178 = vmatpush.msra.mxu1 %v130_v17  ;;  %159 = vmatpush.msra.mxu0 %v125_v20  ;;  %v118_v29 = vld [vmem:[#allocation5 + $0x128] sm:$0xff]  ;;  %v111_v30 = vld [vmem:[#allocation5 + $0xf0] sm:$0xff]  ;;  %v112_v31 = vld [vmem:[#allocation5 + $0xf8] sm:$0xff] }
  0x1f   :  { %200 = vmatpush.msra.mxu2 %v123_v18  ;;  %220 = vmatpush.msra.mxu3 %v124_v19  ;;  %v113_v32 = vld [vmem:[#allocation5 + $0x100] sm:$0xff]  ;;  %v114_v33 = vld [vmem:[#allocation5 + $0x108] sm:$0xff]  ;;  %v107_v34 = vld [vmem:[#allocation5 + $0xd0] sm:$0xff] }
  0x20   :  { %179 = vmatpush.msra.mxu1 %v126_v21  ;;  %160 = vmatpush.msra.mxu0 %v121_v24  ;;  %v108_v35 = vld [vmem:[#allocation5 + $0xd8] sm:$0xff]  ;;  %v109_v36 = vld [vmem:[#allocation5 + $0xe0] sm:$0xff]  ;;  %v110_v37 = vld [vmem:[#allocation5 + $0xe8] sm:$0xff] }
  0x21   :  { %201 = vmatpush.msra.mxu2 %v119_v22  ;;  %221 = vmatpush.msra.mxu3 %v120_v23  ;;  %v103_v38 = vld [vmem:[#allocation5 + $0xb0] sm:$0xff]  ;;  %v104_v39 = vld [vmem:[#allocation5 + $0xb8] sm:$0xff]  ;;  %v105_v40 = vld [vmem:[#allocation5 + $0xc0] sm:$0xff] }
  0x22   :  { %180 = vmatpush.msra.mxu1 %v122_v25  ;;  %161 = vmatpush.msra.mxu0 %v117_v28  ;;  %v106_v41 = vld [vmem:[#allocation5 + $0xc8] sm:$0xff]  ;;  %v99_v42 = vld [vmem:[#allocation5 + $0x90] sm:$0xff]  ;;  %v100_v43 = vld [vmem:[#allocation5 + $0x98] sm:$0xff] }
  0x23   :  { %202 = vmatpush.msra.mxu2 %v115_v26  ;;  %222 = vmatpush.msra.mxu3 %v116_v27  ;;  %v101_v44 = vld [vmem:[#allocation5 + $0xa0] sm:$0xff]  ;;  %v102_v45 = vld [vmem:[#allocation5 + $0xa8] sm:$0xff]  ;;  %v95_v46 = vld [vmem:[#allocation5 + $0x70] sm:$0xff] }
  0x24   :  { %181 = vmatpush.msra.mxu1 %v118_v29  ;;  %162 = vmatpush.msra.mxu0 %v113_v32  ;;  %v96_v47 = vld [vmem:[#allocation5 + $0x78] sm:$0xff]  ;;  %v97_v48 = vld [vmem:[#allocation5 + $0x80] sm:$0xff]  ;;  %v98_v49 = vld [vmem:[#allocation5 + $0x88] sm:$0xff] }
  0x25   :  { %203 = vmatpush.msra.mxu2 %v111_v30  ;;  %223 = vmatpush.msra.mxu3 %v112_v31  ;;  %v91_v50 = vld [vmem:[#allocation5 + $0x50] sm:$0xff]  ;;  %v92_v51 = vld [vmem:[#allocation5 + $0x58] sm:$0xff]  ;;  %v93_v52 = vld [vmem:[#allocation5 + $0x60] sm:$0xff] }
  0x26   :  { %182 = vmatpush.msra.mxu1 %v114_v33  ;;  %163 = vmatpush.msra.mxu0 %v109_v36  ;;  %v94_v53 = vld [vmem:[#allocation5 + $0x68] sm:$0xff]  ;;  %v87_v54 = vld [vmem:[#allocation5 + $0x30] sm:$0xff]  ;;  %v88_v55 = vld [vmem:[#allocation5 + $0x38] sm:$0xff] }
  0x27   :  { %204 = vmatpush.msra.mxu2 %v107_v34  ;;  %224 = vmatpush.msra.mxu3 %v108_v35  ;;  %v89_v56 = vld [vmem:[#allocation5 + $0x40] sm:$0xff]  ;;  %v90_v57 = vld [vmem:[#allocation5 + $0x48] sm:$0xff]  ;;  %v83_v58 = vld [vmem:[#allocation5 + $0x10] sm:$0xff] }
  0x28   :  { %183 = vmatpush.msra.mxu1 %v110_v37  ;;  %164 = vmatpush.msra.mxu0 %v105_v40  ;;  %v84_v59 = vld [vmem:[#allocation5 + $0x18] sm:$0xff]  ;;  %v85_v61 = vld [vmem:[#allocation5 + $0x20] sm:$0xff]  ;;  %v86_v62 = vld [vmem:[#allocation5 + $0x28] sm:$0xff] }
  0x29   :  { %205 = vmatpush.msra.mxu2 %v103_v38  ;;  %225 = vmatpush.msra.mxu3 %v104_v39  ;;  %v80_v60 = vld [vmem:[#allocation2] sm:$0xf]  ;;  %v81_v1 = vld [vmem:[#allocation5] sm:$0xff]  ;;  %v82_v2 = vld [vmem:[#allocation5 + $0x8] sm:$0xff] }
  0x2a   :  { %184 = vmatpush.msra.mxu1 %v106_v41  ;;  %165 = vmatpush.msra.mxu0 %v101_v44  ;;  %v286_v63 = vld [vmem:[#allocation8 + $0x178] sm:$0xff]  ;;  %v285_v4 = vld [vmem:[#allocation8 + $0x170] sm:$0xff]  ;;  %v284_v8 = vld [vmem:[#allocation8 + $0x168] sm:$0xff] }
  0x2b   :  { %206 = vmatpush.msra.mxu2 %v99_v42  ;;  %226 = vmatpush.msra.mxu3 %v100_v43  ;;  %v302_v0 = vld [vmem:[#allocation8 + $0x1f8] sm:$0xff]  ;;  %v301_v6 = vld [vmem:[#allocation8 + $0x1f0] sm:$0xff]  ;;  %v300_v10 = vld [vmem:[#allocation8 + $0x1e8] sm:$0xff] }
  0x2c   :  { %185 = vmatpush.msra.mxu1 %v102_v45  ;;  %166 = vmatpush.msra.mxu0 %v97_v48  ;;  %v254_v3 = vld [vmem:[#allocation8 + $0x78] sm:$0xff]  ;;  %v253_v7 = vld [vmem:[#allocation8 + $0x70] sm:$0xff]  ;;  %v252_v11 = vld [vmem:[#allocation8 + $0x68] sm:$0xff] }
  0x2d   :  { %207 = vmatpush.msra.mxu2 %v95_v46  ;;  %227 = vmatpush.msra.mxu3 %v96_v47  ;;  %v270_v5 = vld [vmem:[#allocation8 + $0xf8] sm:$0xff]  ;;  %v269_v9 = vld [vmem:[#allocation8 + $0xf0] sm:$0xff]  ;;  %v283_v12 = vld [vmem:[#allocation8 + $0x160] sm:$0xff] }
  0x2e   :  { %186 = vmatpush.msra.mxu1 %v98_v49  ;;  %167 = vmatpush.msra.mxu0 %v93_v52  ;;  %v268_v13 = vld [vmem:[#allocation8 + $0xe8] sm:$0xff]  ;;  %v299_v14 = vld [vmem:[#allocation8 + $0x1e0] sm:$0xff]  ;;  %v282_v16 = vld [vmem:[#allocation8 + $0x158] sm:$0xff] }
  0x2f   :  { %208 = vmatpush.msra.mxu2 %v91_v50  ;;  %228 = vmatpush.msra.mxu3 %v92_v51  ;;  %v251_v15 = vld [vmem:[#allocation8 + $0x60] sm:$0xff]  ;;  %v298_v18 = vld [vmem:[#allocation8 + $0x1d8] sm:$0xff]  ;;  %v281_v20 = vld [vmem:[#allocation8 + $0x150] sm:$0xff] }
  0x30   :  { %187 = vmatpush.msra.mxu1 %v94_v53  ;;  %168 = vmatpush.msra.mxu0 %v89_v56  ;;  %v267_v17 = vld [vmem:[#allocation8 + $0xe0] sm:$0xff]  ;;  %v250_v19 = vld [vmem:[#allocation8 + $0x58] sm:$0xff]  ;;  %v297_v22 = vld [vmem:[#allocation8 + $0x1d0] sm:$0xff] }
  0x31   :  { %209 = vmatpush.msra.mxu2 %v87_v54  ;;  %229 = vmatpush.msra.mxu3 %v88_v55  ;;  %v266_v21 = vld [vmem:[#allocation8 + $0xd8] sm:$0xff]  ;;  %v249_v23 = vld [vmem:[#allocation8 + $0x50] sm:$0xff]  ;;  %v280_v24 = vld [vmem:[#allocation8 + $0x148] sm:$0xff] }
  0x32   :  { %188 = vmatpush.msra.mxu1 %v90_v57  ;;  %169 = vmatpush.msra.mxu0 %v85_v61  ;;  %v265_v25 = vld [vmem:[#allocation8 + $0xd0] sm:$0xff]  ;;  %v296_v26 = vld [vmem:[#allocation8 + $0x1c8] sm:$0xff]  ;;  %v279_v28 = vld [vmem:[#allocation8 + $0x140] sm:$0xff] }
  0x33   :  { %210 = vmatpush.msra.mxu2 %v83_v58  ;;  %230 = vmatpush.msra.mxu3 %v84_v59  ;;  %v248_v27 = vld [vmem:[#allocation8 + $0x48] sm:$0xff]  ;;  %v295_v30 = vld [vmem:[#allocation8 + $0x1c0] sm:$0xff]  ;;  %v278_v32 = vld [vmem:[#allocation8 + $0x138] sm:$0xff] }
  0x34   :  { %211 = vmatmul.f32.vlgmr.msra.gmra.mxu2 %v80_v60  ;;  %231 = vmatmul.f32.vlgmr.msra.gmra.mxu3 %v80_v60  ;;  %v264_v29 = vld [vmem:[#allocation8 + $0xc8] sm:$0xff]  ;;  %v247_v31 = vld [vmem:[#allocation8 + $0x40] sm:$0xff]  ;;  %v294_v34 = vld [vmem:[#allocation8 + $0x1b8] sm:$0xff] }
  0x35   :  { %189 = vmatpush.msra.mxu1 %v86_v62  ;;  %347 = vmatpush.msrb.mxu2 %v286_v63  ;;  %v263_v33 = vld [vmem:[#allocation8 + $0xc0] sm:$0xff]  ;;  %v246_v35 = vld [vmem:[#allocation8 + $0x38] sm:$0xff]  ;;  %v277_v36 = vld [vmem:[#allocation8 + $0x130] sm:$0xff] }
  0x36   :  { %367 = vmatpush.msrb.mxu3 %v302_v0  ;;  %170 = vmatpush.msra.mxu0 %v81_v1  ;;  %v262_v37 = vld [vmem:[#allocation8 + $0xb8] sm:$0xff]  ;;  %v293_v38 = vld [vmem:[#allocation8 + $0x1b0] sm:$0xff]  ;;  %v276_v40 = vld [vmem:[#allocation8 + $0x128] sm:$0xff] }
  0x37   :  { %190 = vmatpush.msra.mxu1 %v82_v2  ;;  %171 = vmatmul.f32.vlgmr.msra.gmra.mxu0 %v80_v60  ;;  %v245_v39 = vld [vmem:[#allocation8 + $0x30] sm:$0xff]  ;;  %v292_v42 = vld [vmem:[#allocation8 + $0x1a8] sm:$0xff]  ;;  %v275_v44 = vld [vmem:[#allocation8 + $0x120] sm:$0xff] }
  0x38   :  { %191 = vmatmul.f32.vlgmr.msra.gmra.mxu1 %v80_v60  ;;  %307 = vmatpush.msrb.mxu0 %v254_v3  ;;  %v261_v41 = vld [vmem:[#allocation8 + $0xb0] sm:$0xff]  ;;  %v244_v43 = vld [vmem:[#allocation8 + $0x28] sm:$0xff]  ;;  %v291_v46 = vld [vmem:[#allocation8 + $0x1a0] sm:$0xff] }
  0x39   :  { %348 = vmatpush.msrb.mxu2 %v285_v4  ;;  %327 = vmatpush.msrb.mxu1 %v270_v5  ;;  %v260_v45 = vld [vmem:[#allocation8 + $0xa8] sm:$0xff]  ;;  %v243_v47 = vld [vmem:[#allocation8 + $0x20] sm:$0xff]  ;;  %v274_v48 = vld [vmem:[#allocation8 + $0x118] sm:$0xff] }
  0x3a   :  { %368 = vmatpush.msrb.mxu3 %v301_v6  ;;  %308 = vmatpush.msrb.mxu0 %v253_v7  ;;  %v242_v49 = vld [vmem:[#allocation8 + $0x18] sm:$0xff]  ;;  %v259_v50 = vld [vmem:[#allocation8 + $0xa0] sm:$0xff]  ;;  %v273_v51 = vld [vmem:[#allocation8 + $0x110] sm:$0xff] }
  0x3b   :  { %349 = vmatpush.msrb.mxu2 %v284_v8  ;;  %328 = vmatpush.msrb.mxu1 %v269_v9  ;;  %v290_v52 = vld [vmem:[#allocation8 + $0x198] sm:$0xff]  ;;  %v241_v53 = vld [vmem:[#allocation8 + $0x10] sm:$0xff]  ;;  %v272_v55 = vld [vmem:[#allocation8 + $0x108] sm:$0xff] }
  0x3c   :  { %369 = vmatpush.msrb.mxu3 %v300_v10  ;;  %309 = vmatpush.msrb.mxu0 %v252_v11  ;;  %v258_v54 = vld [vmem:[#allocation8 + $0x98] sm:$0xff]  ;;  %v289_v56 = vld [vmem:[#allocation8 + $0x190] sm:$0xff]  ;;  %v240_v57 = vld [vmem:[#allocation8 + $0x8] sm:$0xff] }
  0x3d   :  { %350 = vmatpush.msrb.mxu2 %v283_v12  ;;  %329 = vmatpush.msrb.mxu1 %v268_v13  ;;  %v257_v58 = vld [vmem:[#allocation8 + $0x90] sm:$0xff]  ;;  %v271_v59 = vld [vmem:[#allocation8 + $0x100] sm:$0xff]  ;;  %v288_v60 = vld [vmem:[#allocation8 + $0x188] sm:$0xff] }
  0x3e   :  { %370 = vmatpush.msrb.mxu3 %v299_v14  ;;  %310 = vmatpush.msrb.mxu0 %v251_v15  ;;  %v239_v61 = vld [vmem:[#allocation8] sm:$0xff]  ;;  %v256_v62 = vld [vmem:[#allocation8 + $0x88] sm:$0xff]  ;;  %v145_v1 = vld [vmem:[#allocation7] sm:$0xf] }
  0x3f   :  { %351 = vmatpush.msrb.mxu2 %v282_v16  ;;  %330 = vmatpush.msrb.mxu1 %v267_v17  ;;  %v287_v63 = vld [vmem:[#allocation8 + $0x180] sm:$0xff]  ;;  %v147_v2 = vperm.slane %v145_v1, 0  ;;  %v148_v3 = vperm.slane %v145_v1, 1  ;;  %v149_v4 = vperm.slane %v145_v1, 2  ;;  %v150_v5 = vperm.slane %v145_v1, 3 }
  0x40   :  { %371 = vmatpush.msrb.mxu3 %v298_v18  ;;  %311 = vmatpush.msrb.mxu0 %v250_v19  ;;  %v255_v0 = vld [vmem:[#allocation8 + $0x80] sm:$0xff]  ;;  %v416_v18 = vld [vmem:[%s606_s4] ss:$0 sm:$0xff] }
  0x41   :  { %352 = vmatpush.msrb.mxu2 %v281_v20  ;;  %331 = vmatpush.msrb.mxu1 %v266_v21 }
  0x42   :  { %372 = vmatpush.msrb.mxu3 %v297_v22  ;;  %312 = vmatpush.msrb.mxu0 %v249_v23 }
  0x43   :  { %353 = vmatpush.msrb.mxu2 %v280_v24  ;;  %332 = vmatpush.msrb.mxu1 %v265_v25 }
  0x44   :  { %373 = vmatpush.msrb.mxu3 %v296_v26  ;;  %313 = vmatpush.msrb.mxu0 %v248_v27 }
  0x45   :  { %354 = vmatpush.msrb.mxu2 %v279_v28  ;;  %333 = vmatpush.msrb.mxu1 %v264_v29 }
  0x46   :  { %374 = vmatpush.msrb.mxu3 %v295_v30  ;;  %314 = vmatpush.msrb.mxu0 %v247_v31 }
  0x47   :  { %355 = vmatpush.msrb.mxu2 %v278_v32  ;;  %334 = vmatpush.msrb.mxu1 %v263_v33 }
  0x48   :  { %375 = vmatpush.msrb.mxu3 %v294_v34  ;;  %315 = vmatpush.msrb.mxu0 %v246_v35 }
  0x49   :  { %356 = vmatpush.msrb.mxu2 %v277_v36  ;;  %335 = vmatpush.msrb.mxu1 %v262_v37 }
  0x4a   :  { %376 = vmatpush.msrb.mxu3 %v293_v38  ;;  %316 = vmatpush.msrb.mxu0 %v245_v39 }
  0x4b   :  { %357 = vmatpush.msrb.mxu2 %v276_v40  ;;  %336 = vmatpush.msrb.mxu1 %v261_v41 }
  0x4c   :  { %377 = vmatpush.msrb.mxu3 %v292_v42  ;;  %317 = vmatpush.msrb.mxu0 %v244_v43 }
  0x4d   :  { %358 = vmatpush.msrb.mxu2 %v275_v44  ;;  %337 = vmatpush.msrb.mxu1 %v260_v45 }
  0x4e   :  { %378 = vmatpush.msrb.mxu3 %v291_v46  ;;  %318 = vmatpush.msrb.mxu0 %v243_v47 }
  0x4f   :  { %359 = vmatpush.msrb.mxu2 %v274_v48  ;;  %338 = vmatpush.msrb.mxu1 %v259_v50 }
  0x50   :  { %319 = vmatpush.msrb.mxu0 %v242_v49  ;;  %379 = vmatpush.msrb.mxu3 %v290_v52 }
  0x51   :  { %360 = vmatpush.msrb.mxu2 %v273_v51  ;;  %339 = vmatpush.msrb.mxu1 %v258_v54 }
  0x52   :  { %320 = vmatpush.msrb.mxu0 %v241_v53  ;;  %380 = vmatpush.msrb.mxu3 %v289_v56 }
  0x53   :  { %361 = vmatpush.msrb.mxu2 %v272_v55  ;;  %340 = vmatpush.msrb.mxu1 %v257_v58 }
  0x54   :  { %321 = vmatpush.msrb.mxu0 %v240_v57  ;;  %381 = vmatpush.msrb.mxu3 %v288_v60 }
  0x55   :  { %362 = vmatpush.msrb.mxu2 %v271_v59  ;;  %341 = vmatpush.msrb.mxu1 %v256_v62 }
  0x56   :  { %322 = vmatpush.msrb.mxu0 %v239_v61  ;;  %382 = vmatpush.msrb.mxu3 %v287_v63 }
  0x57   :  { %342 = vmatpush.msrb.mxu1 %v255_v0 }
  0xb4   :  { %v172_v6 = vpop.f32.mrf.mxu0 }
  0xb5   :  { %v192_v7 = vpop.f32.mrf.mxu1  ;;  %v173_v8 = vadd.f32 %v172_v6, %v147_v2 }
  0xb6   :  { %v193_v9 = vadd.f32 %v192_v7, %v148_v3 }
  0xb7   :  { %v212_v10 = vpop.f32.mrf.mxu2  ;;  %v232_v11 = vpop.f32.mrf.mxu3  ;;  %v235_v13 = vmax.f32 %v173_v8, 0.0 }
  0xb8   :  { %v213_v12 = vadd.f32 %v212_v10, %v149_v4  ;;  %v233_v14 = vadd.f32 %v232_v11, %v150_v5  ;;  %v236_v15 = vmax.f32 %v193_v9, 0.0 }
  0xb9   :  { %323 = vmatmul.f32.vlgmr.msrb.gmra.mxu0 %v235_v13 }
  0xba   :  { %v237_v16 = vmax.f32 %v213_v12, 0.0  ;;  %v238_v17 = vmax.f32 %v233_v14, 0.0  ;;  %343 = vmatmul.f32.vlgmr.msrb.gmra.mxu1 %v236_v15 }
  0xbc   :  { %363 = vmatmul.f32.vlgmr.msrb.gmra.mxu2 %v237_v16  ;;  %383 = vmatmul.f32.vlgmr.msrb.gmra.mxu3 %v238_v17 }
 0x136   :  { %v324_v19 = vpop.f32.mrf.mxu0 }
 0x137   :  { %v325_v20 = vadd.f32 %v416_v18, %v324_v19  ;;  %v344_v21 = vpop.f32.mrf.mxu1 }
 0x139   :  { %v345_v22 = vadd.f32 %v344_v21, %v325_v20 }
 0x13f   :  { %v364_v23 = vpop.f32.mrf.mxu2  ;;  %v384_v24 = vpop.f32.mrf.mxu3 }
 0x140   :  { %v365_v25 = vadd.f32 %v364_v23, %v345_v22 }
 0x142   :  { %v385_v26 = vadd.f32 %v384_v24, %v365_v25 }
 0x144   :  { %387 = vst [vmem:[#allocation10] sm:$0xf] %v385_v26 }
 0x145   :  { %398 = dma.vmem_to_hbm [thread:$0]  %s394_s16, 64, %s396_s19, [#allocation4]  }
 0x146   :  { %543 = dma.done.wait [#allocation4], 64  }
 0x147   :  { %544 = vsyncadd [#allocation4], 4294967232 }
 0x148   :  { %403 = vsyncpa [#allocation3], 1 }
 0x149   :  { %404 = vsyncpa [#allocation6], 1 }
 0x14a   :  { %405 = vsyncpa [#allocation9], 1 }
 0x14b   :  { %406 = vsyncpa [#allocation4], 1 }

</bundles_post_ra>
